<compile_context>
chip_gen: v5e
topology: v5e:2x2
jax: 0.10.0
libtpu: 0.0.40
codegen_flags: <defaults>
</compile_context>

<pallas_src>
import functools

import jax
import jax.numpy as jnp
from jax.experimental import pallas as pl
from jax.experimental.pallas import tpu as pltpu

SUBLANE = 8  # f32 sublane granularity (second-to-last vreg dim)


def _round_up(n, m):
    return ((n + m - 1) // m) * m


def resblock_stack_kernel(x_ref, w1_ref, b1_ref, w2_ref, b2_ref, o_ref):
    """Applies N fused ResBlocks to one (TB, L) activation tile.

    x_ref:  (TB, L)   f32   activation tile (batch rows x features)
    w1_ref: (N, L, L) bf16  Linear1 weights, (in, out) layout, VMEM-resident
    b1_ref: (N, 1, L) f32   Linear1 biases
    w2_ref: (N, L, L) bf16  Linear2 weights, (in, out) layout, VMEM-resident
    b2_ref: (N, 1, L) f32   Linear2 biases
    o_ref:  (TB, L)   f32
    """
    x = x_ref[...]
    num_blocks = w1_ref.shape[0]
    # N is small (1 here) -> static unroll is right.  For N >> 8 switch to
    # lax.fori_loop with dynamic first-axis indexing to bound vreg live ranges.
    for n in range(num_blocks):
        h = jnp.maximum(x, 0.0).astype(w1_ref.dtype)                    # ReLU (VPU)
        h = jnp.dot(h, w1_ref[n], preferred_element_type=jnp.float32)   # Linear1 (MXU)
        h = h + b1_ref[n]
        h = jnp.maximum(h, 0.0).astype(w2_ref.dtype)                    # ReLU (VPU)
        h = jnp.dot(h, w2_ref[n], preferred_element_type=jnp.float32)   # Linear2 (MXU)
        h = h + b2_ref[n]
        x = x + h                                                       # residual (f32)
    o_ref[...] = x


def prepare_resblock_params(blocks, layer, compute_dtype=jnp.bfloat16):
    """One-time (init-time) parameter prep: transpose to (in, out) layout, cast
    weights to bf16 for the MXU, and stack all ResBlocks along a leading axis
    so a whole stack runs in one kernel launch.

    blocks: list of (w1, b1, w2, b2) in PyTorch layout: w (out, in), b (out,).
    Note: weights are quantized to bf16 once here (f32 accumulation in-kernel);
    this deviates from the pure-f32 PyTorch module at ~1e-2 relative level.
    """
    w1s, b1s, w2s, b2s = [], [], [], []
    for (w1, b1, w2, b2) in blocks:
        w1s.append(w1.T.astype(compute_dtype))
        w2s.append(w2.T.astype(compute_dtype))
        b1s.append(b1.reshape(1, layer).astype(jnp.float32))
        b2s.append(b2.reshape(1, layer).astype(jnp.float32))
    return (jnp.stack(w1s), jnp.stack(b1s), jnp.stack(w2s), jnp.stack(b2s))


def _choose_batch_tile(b, block_batch):
    """Pick a batch tile: multiple of 8 rows, no gross over-padding, and (when
    the batch allows) at least 2 grid steps so v7x can use both TensorCores."""
    if b <= 2 * SUBLANE:
        return b  # single tile equal to the full dim (legal even if b % 8 != 0)
    half = _round_up((b + 1) // 2, SUBLANE)   # guarantees >= 2 grid steps
    return min(block_batch, half)


@functools.partial(jax.jit, static_argnames=("block_batch",))
def resblock_forward(x, w1s, b1s, w2s, b2s, *, block_batch=512):
    """x: (B, L) f32.  w1s/w2s: (N, L, L) in (in, out) layout; b1s/b2s: (N, 1, L)."""
    b, l = x.shape
    n = w1s.shape[0]

    tb = _choose_batch_tile(b, block_batch)
    grid = (pl.cdiv(b, tb),)   # boundary tile (if any) is masked by Pallas;
                               # no wrapper-side batch padding / output slicing.

    act_spec = pl.BlockSpec((tb, l), lambda i: (i, 0))
    resident_w = pl.BlockSpec((n, l, l), lambda i: (0, 0, 0))   # VMEM-resident
    resident_b = pl.BlockSpec((n, 1, l), lambda i: (0, 0, 0))   # VMEM-resident

    # VMEM budget per step: 2*N*L*L*2 B of bf16 weights (~4 KiB here) plus the
    # double-buffered (tb, L) f32 activation tiles (~256 KiB at tb=512, L=32)
    # -- far below even v7x's 32 MiB scoped default, so no vmem_limit override.
    return pl.pallas_call(
        resblock_stack_kernel,
        out_shape=jax.ShapeDtypeStruct((b, l), jnp.float32),
        grid=grid,
        in_specs=[
            act_spec,      # x tile (auto double-buffered / pipelined)
            resident_w,    # w1 stack
            resident_b,    # b1 stack
            resident_w,    # w2 stack
            resident_b,    # b2 stack
        ],
        out_specs=act_spec,
        compiler_params=pltpu.CompilerParams(
            # Batch axis is embarrassingly parallel -> 2-TC sharding on v7x.
            dimension_semantics=("parallel",),
        ),
    )(x, w1s, b1s, w2s, b2s)


def reference_forward(x, w1, b1, w2, b2):
    h = jnp.maximum(x, 0.0)
    h = h @ w1.T + b1
    h = jnp.maximum(h, 0.0)
    h = h @ w2.T + b2
    return x + h


def reference_forward_bf16(x, w1, b1, w2, b2):
    bf = jnp.bfloat16
    h = jnp.maximum(x, 0.0)
    h = jnp.dot(h.astype(bf), w1.T.astype(bf), preferred_element_type=jnp.float32) + b1
    h = jnp.maximum(h, 0.0)
    h = jnp.dot(h.astype(bf), w2.T.astype(bf), preferred_element_type=jnp.float32) + b2
    return x + h


if __name__ == "__main__":
    key = jax.random.PRNGKey(0)
    layer = 32    # ResBlock width
    batch = 8

    k_x, k_w1, k_b1, k_w2, k_b2 = jax.random.split(key, 5)
    bound = 1.0 / (layer ** 0.5)     # nn.Linear default init range
    x = jax.random.normal(k_x, (batch, layer), dtype=jnp.float32)
    w1 = jax.random.uniform(k_w1, (layer, layer), jnp.float32, -bound, bound)
    b1 = jax.random.uniform(k_b1, (layer,), jnp.float32, -bound, bound)
    w2 = jax.random.uniform(k_w2, (layer, layer), jnp.float32, -bound, bound)
    b2 = jax.random.uniform(k_b2, (layer,), jnp.float32, -bound, bound)

    # One ResBlock (matches the PyTorch module).  The same kernel fuses a whole
    # stack in one launch if more (w1, b1, w2, b2) tuples are passed here.
    params = prepare_resblock_params([(w1, b1, w2, b2)], layer)

    out = resblock_forward(x, *params)
    out = jax.block_until_ready(out)
    assert out.shape == (batch, layer)

    # Matched-precision reference (bf16 MXU inputs, f32 accumulation).
    ref_bf16 = reference_forward_bf16(x, w1, b1, w2, b2)
    assert jnp.allclose(out, ref_bf16, atol=5e-3, rtol=5e-3), "mismatch vs bf16 reference"

    # Full-f32 reference: only bf16 weight/input quantization error expected.
    ref_f32 = reference_forward(x, w1, b1, w2, b2)
    assert jnp.allclose(out, ref_f32, atol=5e-2, rtol=5e-2), "mismatch vs f32 reference"

    print("KERNEL_OK")
</pallas_src>

<mosaic_0001>
module attributes {stable_mosaic.version = 11 : i64} {
  func.func @resblock_stack_kernel(%arg0: i32, %arg1: memref<8x32xf32, #tpu.memory_space<vmem>>, %arg2: memref<1x32x32xbf16, #tpu.memory_space<vmem>>, %arg3: memref<1x1x32xf32, #tpu.memory_space<vmem>>, %arg4: memref<1x32x32xbf16, #tpu.memory_space<vmem>>, %arg5: memref<1x1x32xf32, #tpu.memory_space<vmem>>, %arg6: memref<8x32xf32, #tpu.memory_space<vmem>>) attributes {dimension_semantics = [#tpu.dimension_semantics<parallel>], iteration_bounds = array<i64: 1>, scalar_prefetch = 0 : i64, scratch_operands = 0 : i64, tpu.core_type = #tpu.core_type<tc>, window_params = [{transform_indices = @transform_0, window_bounds = array<i64: 8, 32>}, {pipeline_mode = #tpu.pipeline_mode<synchronous>, transform_indices = @transform_1, window_bounds = array<i64: 1, 32, 32>}, {pipeline_mode = #tpu.pipeline_mode<synchronous>, transform_indices = @transform_2, window_bounds = array<i64: 1, 1, 32>}, {pipeline_mode = #tpu.pipeline_mode<synchronous>, transform_indices = @transform_3, window_bounds = array<i64: 1, 32, 32>}, {pipeline_mode = #tpu.pipeline_mode<synchronous>, transform_indices = @transform_4, window_bounds = array<i64: 1, 1, 32>}, {transform_indices = @transform_5, window_bounds = array<i64: 8, 32>}]} {
    %c0 = arith.constant 0 : index
    %c0_0 = arith.constant 0 : index
    %0 = vector.load %arg1[%c0, %c0_0] : memref<8x32xf32, #tpu.memory_space<vmem>>, vector<8x32xf32>
    %cst = arith.constant 0.000000e+00 : f32
    %1 = vector.broadcast %cst : f32 to vector<8x32xf32>
    %2 = arith.maximumf %0, %1 : vector<8x32xf32>
    %3 = arith.truncf %2 : vector<8x32xf32> to vector<8x32xbf16>
    %c0_1 = arith.constant 0 : index
    %c0_2 = arith.constant 0 : index
    %c0_3 = arith.constant 0 : index
    %4 = vector.load %arg2[%c0_1, %c0_2, %c0_3] : memref<1x32x32xbf16, #tpu.memory_space<vmem>>, vector<1x32x32xbf16>
    %5 = vector.shape_cast %4 : vector<1x32x32xbf16> to vector<32x32xbf16>
    %cst_4 = arith.constant dense<0.000000e+00> : vector<8x32xf32>
    %6 = tpu.matmul %3, %5, %cst_4 {dimension_numbers = #tpu.dot_dimension_numbers<[1], [0], [0], [1], [0, 0, 1, 1], [], []>} : vector<8x32xbf16>, vector<32x32xbf16>, vector<8x32xf32> -> vector<8x32xf32>
    %c0_5 = arith.constant 0 : index
    %c0_6 = arith.constant 0 : index
    %c0_7 = arith.constant 0 : index
    %7 = vector.load %arg3[%c0_5, %c0_6, %c0_7] : memref<1x1x32xf32, #tpu.memory_space<vmem>>, vector<1x1x32xf32>
    %8 = vector.shape_cast %7 : vector<1x1x32xf32> to vector<1x32xf32>
    %9 = vector.broadcast %8 : vector<1x32xf32> to vector<8x32xf32>
    %10 = arith.addf %6, %9 : vector<8x32xf32>
    %cst_8 = arith.constant 0.000000e+00 : f32
    %11 = vector.broadcast %cst_8 : f32 to vector<8x32xf32>
    %12 = arith.maximumf %10, %11 : vector<8x32xf32>
    %13 = arith.truncf %12 : vector<8x32xf32> to vector<8x32xbf16>
    %c0_9 = arith.constant 0 : index
    %c0_10 = arith.constant 0 : index
    %c0_11 = arith.constant 0 : index
    %14 = vector.load %arg4[%c0_9, %c0_10, %c0_11] : memref<1x32x32xbf16, #tpu.memory_space<vmem>>, vector<1x32x32xbf16>
    %15 = vector.shape_cast %14 : vector<1x32x32xbf16> to vector<32x32xbf16>
    %cst_12 = arith.constant dense<0.000000e+00> : vector<8x32xf32>
    %16 = tpu.matmul %13, %15, %cst_12 {dimension_numbers = #tpu.dot_dimension_numbers<[1], [0], [0], [1], [0, 0, 1, 1], [], []>} : vector<8x32xbf16>, vector<32x32xbf16>, vector<8x32xf32> -> vector<8x32xf32>
    %c0_13 = arith.constant 0 : index
    %c0_14 = arith.constant 0 : index
    %c0_15 = arith.constant 0 : index
    %17 = vector.load %arg5[%c0_13, %c0_14, %c0_15] : memref<1x1x32xf32, #tpu.memory_space<vmem>>, vector<1x1x32xf32>
    %18 = vector.shape_cast %17 : vector<1x1x32xf32> to vector<1x32xf32>
    %19 = vector.broadcast %18 : vector<1x32xf32> to vector<8x32xf32>
    %20 = arith.addf %16, %19 : vector<8x32xf32>
    %21 = arith.addf %0, %20 : vector<8x32xf32>
    %c0_16 = arith.constant 0 : index
    %c0_17 = arith.constant 0 : index
    %22 = vector.load %arg6[%c0_16, %c0_17] : memref<8x32xf32, #tpu.memory_space<vmem>>, vector<8x32xf32>
    tpu.vector_store %arg6[%c0_16, %c0_17], %21 {strides = array<i32>} : memref<8x32xf32, #tpu.memory_space<vmem>>, vector<8x32xf32>,
    return
  }
  func.func @transform_0(%arg0: i32) -> (i32, i32) {
    %c0_i32 = arith.constant 0 : i32
    %c0_i32_0 = arith.constant 0 : i32
    return %arg0, %c0_i32 : i32, i32
  }
  func.func @transform_1(%arg0: i32) -> (i32, i32, i32) {
    %c0_i32 = arith.constant 0 : i32
    %c0_i32_0 = arith.constant 0 : i32
    %c0_i32_1 = arith.constant 0 : i32
    %c0_i32_2 = arith.constant 0 : i32
    return %c0_i32, %c0_i32_0, %c0_i32_1 : i32, i32, i32
  }
  func.func @transform_2(%arg0: i32) -> (i32, i32, i32) {
    %c0_i32 = arith.constant 0 : i32
    %c0_i32_0 = arith.constant 0 : i32
    %c0_i32_1 = arith.constant 0 : i32
    %c0_i32_2 = arith.constant 0 : i32
    return %c0_i32, %c0_i32_0, %c0_i32_1 : i32, i32, i32
  }
  func.func @transform_3(%arg0: i32) -> (i32, i32, i32) {
    %c0_i32 = arith.constant 0 : i32
    %c0_i32_0 = arith.constant 0 : i32
    %c0_i32_1 = arith.constant 0 : i32
    %c0_i32_2 = arith.constant 0 : i32
    return %c0_i32, %c0_i32_0, %c0_i32_1 : i32, i32, i32
  }
  func.func @transform_4(%arg0: i32) -> (i32, i32, i32) {
    %c0_i32 = arith.constant 0 : i32
    %c0_i32_0 = arith.constant 0 : i32
    %c0_i32_1 = arith.constant 0 : i32
    %c0_i32_2 = arith.constant 0 : i32
    return %c0_i32, %c0_i32_0, %c0_i32_1 : i32, i32, i32
  }
  func.func @transform_5(%arg0: i32) -> (i32, i32) {
    %c0_i32 = arith.constant 0 : i32
    %c0_i32_0 = arith.constant 0 : i32
    return %arg0, %c0_i32 : i32, i32
  }
}

</mosaic_0001>

<bundles_post_ra>
// kernel: resblock_forward.1
= control target key start
LH: loop header
LB: loop body
LE: loop exit
PB: predicated region body
PF: predicated region fallthrough
CT: control target
= control target key end

     0   :  { %10 = vsyncpa [#allocation3], 0  ;;  %s354_s0 = inlined_call_operand.hbm [shape: f32[8,32], index: 0, kind: input, shape index: {}]   ;;  %s355_s1 = inlined_call_operand.hbm [shape: bf16[1,32,32], index: 1, kind: input, shape index: {}]   ;;  %s356_s2 = inlined_call_operand.vmem [shape: f32[1,1,32], index: 2, kind: input, shape index: {}]   ;;  %s357_s3 = inlined_call_operand.hbm [shape: bf16[1,32,32], index: 3, kind: input, shape index: {}]   ;;  %s358_s4 = inlined_call_operand.vmem [shape: f32[1,1,32], index: 4, kind: input, shape index: {}]   ;;  %s359_s5 = inlined_call_operand.hbm [shape: f32[8,32], index: 5, kind: output, shape index: {}]  }
   0x1   :  { %11 = vsyncpa [#allocation6], 0  ;;  %s28_s20 = sshll.u32 %s355_s1, 4  ;;  %s29_s20 = int_to_ptr.hbm [resolvable:$true] %s28_s20 }
   0x2   :  { %12 = vsyncpa [#allocation4], 0  ;;  %s297_s21 = smov [#allocation5]   ;;  %s18_s25 = sshll.u32 %s354_s0, 4  ;;  %s19_s25 = int_to_ptr.hbm [resolvable:$true] %s18_s25 }
   0x3   :  { %s30_s22 = sshll.u32 %s297_s21, 4  ;;  %s298_s26 = smov 64   ;;  %s31_s22 = int_to_ptr.vmem [resolvable:$true] %s30_s22 }
   0x4   :  { %s299_s27 = smov 4   ;;  %s300_s28 = smov [#allocation2]  }
   0x5   :  { %36 = dma.hbm_to_vmem [thread:$0]  %s29_s20, 256, %s31_s22, [#allocation6], %s298_s26, %s298_s26, %s299_s27  }
   0x6   :  { %s20_s29 = sshll.u32 %s300_s28, 4  ;;  %s43_s7 = sshll.u32 %s357_s3, 4  ;;  %s21_s29 = int_to_ptr.vmem [resolvable:$true] %s20_s29  ;;  %s44_s7 = int_to_ptr.hbm [resolvable:$true] %s43_s7 }
   0x7   :  { %23 = dma.hbm_to_vmem [thread:$0]  %s19_s25, 128, %s21_s29, [#allocation3]  }
   0x8   :  { %s301_s1 = smov [#allocation7]  }
   0x9   :  { %s45_s8 = sshll.u32 %s301_s1, 4  ;;  %s46_s8 = int_to_ptr.vmem [resolvable:$true] %s45_s8 }
   0xa   :  { %51 = dma.hbm_to_vmem [thread:$0]  %s44_s7, 256, %s46_s8, [#allocation6], %s298_s26, %s298_s26, %s299_s27  }
   0xb   :  { %291 = dma.done.wait [#allocation3], 128  }
   0xc   :  { %292 = vsyncadd [#allocation3], 4294967168 }
   0xd   :  { %293 = dma.done.wait [#allocation6], 512  }
   0xe   :  { %294 = vsyncadd [#allocation6], 4294966784  ;;  %v184_v0 = vld [vmem:[#allocation5 + $0x8] sm:$0xff]  ;;  %v67_v1 = vld [vmem:[#allocation2] sm:$0xff]  ;;  %vm90_vm0 = vcmask 261120   ;;  %s302_s11 = smov [#allocation8]  }
   0xf   :  { %v68_v2 = vmax.f32 %v67_v1, 0.0  ;;  %100 = vmatpush.bf16.msra.mxu0 %v184_v0  ;;  %v183_v3 = vld [vmem:[#allocation5] sm:$0xff]  ;;  %v186_v5 = vld [vmem:[#allocation7 + $0x8] sm:$0xff]  ;;  %v185_v6 = vld [vmem:[#allocation7] sm:$0xff]  ;;  %s152_s12 = sshll.u32 %s302_s11, 4  ;;  %s154_s15 = sshll.u32 %s359_s5, 4  ;;  %s153_s12 = int_to_ptr.vmem [resolvable:$true] %s152_s12  ;;  %s155_s15 = int_to_ptr.hbm [resolvable:$true] %s154_s15 }
  0x10   :  { %138 = vmatpush.bf16.msra.mxu1 %v186_v5  ;;  %v193_v7 = vld [vmem:[%s356_s2] ss:$0 sm:$0xff] }
  0x11   :  { %v69_v4 = vpack.c.bf16 %v68_v2, %v68_v2  ;;  %v194_v13 = vld [vmem:[%s358_s4] ss:$0 sm:$0xff] }
  0x13   :  { %101 = vmatpush.bf16.msra.mxu0 %v183_v3 }
  0x14   :  { %139 = vmatpush.bf16.msra.mxu1 %v185_v6 }
  0x16   :  { %173 = vmatmul.msk.bf16.vlgmr.msra.gmra.mxu0 %vm90_vm0, %v69_v4 }
  0x93   :  { %v103_v8 = vpop.f32.mrf.mxu0 }
  0x94   :  { %v104_v9 = vadd.f32 %v193_v7, %v103_v8 }
  0x96   :  { %v107_v10 = vmax.f32 %v104_v9, 0.0 }
  0x98   :  { %v108_v11 = vpack.c.bf16 %v107_v10, %v107_v10 }
  0x9a   :  { %182 = vmatmul.msk.bf16.vlgmr.msra.gmra.mxu1 %vm90_vm0, %v108_v11 }
  0x9b   :  { %v105_v12 = vpop.f32.mrf.mxu0 }
 0x117   :  { %v141_v14 = vpop.f32.mrf.mxu1 }
 0x118   :  { %v142_v15 = vadd.f32 %v194_v13, %v141_v14 }
 0x11a   :  { %v145_v16 = vadd.f32 %v142_v15, %v67_v1 }
 0x11c   :  { %146 = vst.msk [vmem:[#allocation8] sm:$0xff] %vm90_vm0, %v145_v16 }
 0x11d   :  { %157 = dma.vmem_to_hbm [thread:$0]  %s153_s12, 128, %s155_s15, [#allocation4]  }
 0x11f   :  { %v143_v17 = vpop.f32.mrf.mxu1 }
 0x120   :  { %295 = dma.done.wait [#allocation4], 128  }
 0x121   :  { %296 = vsyncadd [#allocation4], 4294967168 }
 0x122   :  { %162 = vsyncpa [#allocation3], 1 }
 0x123   :  { %163 = vsyncpa [#allocation6], 1 }
 0x124   :  { %164 = vsyncpa [#allocation4], 1 }

</bundles_post_ra>
